<compile_context>
chip_gen: v7x
topology: tpu7x:2x2x1
jax: 0.10.0
libtpu: 0.0.40
codegen_flags: <defaults>
</compile_context>

<pallas_src>
import functools

import jax
import jax.numpy as jnp
from jax import lax
from jax.experimental import pallas as pl
from jax.experimental.pallas import tpu as pltpu

H_1 = 30
H_2 = 20


def _round_up(n, m):
    return ((n + m - 1) // m) * m


def _fcn_kernel(x_ref, w1_ref, b1_ref, w2_ref, b2_ref, w3_ref, b3_ref,
                out_ref, *, out_range, clamp):
    """One batch tile: 3 MXU matmuls (feature-major), tanh on the EUP, clip."""
    mm_dtype = w1_ref.dtype
    x = x_ref[...].astype(mm_dtype)                       # [TB, F]
    # Layer 1: contract x's feature dim against W1^T (trans-B dot) -> [H1, TB].
    h1 = jnp.tanh(
        lax.dot_general(w1_ref[...], x, (((1,), (1,)), ((), ())),
                        preferred_element_type=jnp.float32)
        + b1_ref[...])                                     # [H1, TB] f32
    h2 = jnp.tanh(
        jnp.dot(w2_ref[...], h1.astype(mm_dtype),
                preferred_element_type=jnp.float32)
        + b2_ref[...])                                     # [H2, TB] f32
    out = (jnp.dot(w3_ref[...], h2.astype(mm_dtype),
                   preferred_element_type=jnp.float32)
           + b3_ref[...])                                  # [1, TB] lane-dense
    if out_range is not None and clamp:
        out = jnp.clip(out, jnp.float32(out_range[0]), jnp.float32(out_range[1]))
    out_ref[...] = out.astype(out_ref.dtype)


def _choose_batch_tile(batch, block_batch):
    """Lane-aligned batch tile with bounded pad waste and >=2 grid steps."""
    if batch <= 128:
        return batch                       # one full-extent tile, no masking
    block_batch = max(128, _round_up(block_batch, 128))
    # >=2 tiles so the "parallel" batch axis can shard over both v7x TCs,
    # more tiles as batch grows (bounded-waste: TB ~ cdiv(batch, n_tiles)).
    n_tiles = max(2, pl.cdiv(batch, block_batch))
    tb = _round_up(pl.cdiv(batch, n_tiles), 128)
    return min(tb, block_batch)


def fcn_init(key, num_inputs):
    """Deterministic parameter init mirroring the torch.randn shapes."""
    k1, k2, k3, k4, k5, k6 = jax.random.split(key, 6)
    return {
        "W_1": jax.random.normal(k1, (num_inputs, H_1), jnp.float32),
        "B_1": jax.random.normal(k2, (H_1,), jnp.float32),
        "W_2": jax.random.normal(k3, (H_1, H_2), jnp.float32),
        "B_2": jax.random.normal(k4, (H_2,), jnp.float32),
        "W_3": jax.random.normal(k5, (H_2, 1), jnp.float32),
        "B_3": jax.random.normal(k6, (1,), jnp.float32),
    }


def fcn_forward(x, params, out_range=None, clamp=True,
                block_batch=8192, use_bf16_inputs=False):
    """Forward pass equivalent to fcn.forward (including clamp logic)."""
    x = jnp.asarray(x)
    if use_bf16_inputs:
        mm_dtype = jnp.bfloat16
        if x.dtype != jnp.bfloat16:
            x = x.astype(jnp.float32)      # stream f32; operand cast in-kernel
    else:
        mm_dtype = jnp.float32
        x = x.astype(jnp.float32)
    if x.ndim == 1:
        x = x[None, :]                     # single sample -> batch of 1
    batch, num_inputs = x.shape

    # Feature-major (transposed) weights; tiny, prepared once outside.
    w1t = jnp.asarray(params["W_1"], jnp.float32).T.astype(mm_dtype)   # [H1, F]
    w2t = jnp.asarray(params["W_2"], jnp.float32).T.astype(mm_dtype)   # [H2, H1]
    w3t = jnp.asarray(params["W_3"], jnp.float32).T.astype(mm_dtype)   # [1, H2]
    b1 = jnp.asarray(params["B_1"], jnp.float32).reshape(H_1, 1)
    b2 = jnp.asarray(params["B_2"], jnp.float32).reshape(H_2, 1)
    b3 = jnp.asarray(params["B_3"], jnp.float32).reshape(1, 1)

    TB = _choose_batch_tile(batch, block_batch)
    grid = (pl.cdiv(batch, TB),)
    const = lambda i: (0, 0)               # weights/biases: resident, DMA'd once

    x_bytes = int(x.size) * jnp.dtype(x.dtype).itemsize
    w_bytes = int(w1t.size + w2t.size + w3t.size) * jnp.dtype(mm_dtype).itemsize
    cost = pl.CostEstimate(
        flops=2 * batch * (num_inputs * H_1 + H_1 * H_2 + H_2),
        transcendentals=batch * (H_1 + H_2),
        bytes_accessed=x_bytes + 4 * batch + w_bytes + 4 * (H_1 + H_2 + 1),
    )

    out2d = pl.pallas_call(
        functools.partial(_fcn_kernel, out_range=out_range, clamp=clamp),
        out_shape=jax.ShapeDtypeStruct((1, batch), jnp.float32),
        grid=grid,
        in_specs=[
            pl.BlockSpec((TB, num_inputs), lambda i: (i, 0)),   # x (streamed)
            pl.BlockSpec((H_1, num_inputs), const),             # W1^T
            pl.BlockSpec((H_1, 1), const),                      # b1
            pl.BlockSpec((H_2, H_1), const),                    # W2^T
            pl.BlockSpec((H_2, 1), const),                      # b2
            pl.BlockSpec((1, H_2), const),                      # W3^T
            pl.BlockSpec((1, 1), const),                        # b3
        ],
        out_specs=pl.BlockSpec((1, TB), lambda i: (0, i)),      # lane-dense out
        compiler_params=pltpu.CompilerParams(
            dimension_semantics=("parallel",),
            vmem_limit_bytes=(48 * 1024 * 1024 if TB > 8192 else None)),
        cost_estimate=cost,
    )(x, w1t, b1, w2t, b2, w3t, b3)

    # torch.squeeze semantics: (1, batch) -> (batch,), and batch==1 -> scalar.
    return jnp.squeeze(out2d)


def _reference_forward(x, params, out_range=None, clamp=True):
    x = jnp.asarray(x, jnp.float32)
    h1 = jnp.tanh(x @ params["W_1"] + params["B_1"])
    h2 = jnp.tanh(h1 @ params["W_2"] + params["B_2"])
    out = jnp.squeeze(h2 @ params["W_3"] + params["B_3"])
    if out_range is None or not clamp:
        return out
    return jnp.clip(out, out_range[0], out_range[1])


def _reference_forward_bf16(x, params):
    """Mirror of the kernel's bf16 operand path (bf16 operands, f32 accumulate)."""
    bf = jnp.bfloat16
    x = jnp.asarray(x, jnp.float32).astype(bf)
    w1 = jnp.asarray(params["W_1"], jnp.float32).astype(bf)
    w2 = jnp.asarray(params["W_2"], jnp.float32).astype(bf)
    w3 = jnp.asarray(params["W_3"], jnp.float32).astype(bf)
    h1 = jnp.tanh(jnp.dot(x, w1, preferred_element_type=jnp.float32) + params["B_1"])
    h2 = jnp.tanh(jnp.dot(h1.astype(bf), w2, preferred_element_type=jnp.float32)
                  + params["B_2"])
    return jnp.squeeze(jnp.dot(h2.astype(bf), w3, preferred_element_type=jnp.float32)
                       + params["B_3"])


# TODO(synk): weight-file loading and the Adam training loop from the PyTorch
# module are host-side concerns with no Pallas equivalent; only forward() is
# implemented as a kernel.

if __name__ == "__main__":
    key = jax.random.PRNGKey(0)
    pkey, xkey, x2key = jax.random.split(key, 3)

    num_inputs = 8
    params = fcn_init(pkey, num_inputs)

    # Small batch: single full-extent tile, unbounded output.
    x = jax.random.normal(xkey, (4, num_inputs), jnp.float32)
    out = jax.block_until_ready(fcn_forward(x, params, out_range=None, clamp=True))
    ref = _reference_forward(x, params, out_range=None, clamp=True)
    assert out.shape == ref.shape
    assert jnp.allclose(out, ref, atol=1e-4, rtol=1e-4)

    # Clamped output path.
    out_c = jax.block_until_ready(
        fcn_forward(x, params, out_range=(-1.0, 1.0), clamp=True))
    ref_c = _reference_forward(x, params, out_range=(-1.0, 1.0), clamp=True)
    assert jnp.allclose(out_c, ref_c, atol=1e-4, rtol=1e-4)

    # Multi-tile path: grid > 1, ragged last tile (300 = 2*128 + 44 masked).
    x2 = jax.random.normal(x2key, (300, num_inputs), jnp.float32)
    out2 = jax.block_until_ready(fcn_forward(x2, params, block_batch=128))
    ref2 = _reference_forward(x2, params)
    assert out2.shape == ref2.shape
    assert jnp.allclose(out2, ref2, atol=1e-4, rtol=1e-4)

    # bf16 operand-streaming path vs. a matching bf16-quantized reference.
    out_bf = jax.block_until_ready(fcn_forward(x2, params, use_bf16_inputs=True))
    ref_bf = _reference_forward_bf16(x2, params)
    assert jnp.allclose(out_bf, ref_bf, atol=1e-2, rtol=1e-2)

    # 1-D single-sample input -> scalar (torch.squeeze of shape [1]).
    out1 = jax.block_until_ready(fcn_forward(x[0], params))
    assert out1.shape == ()
    assert jnp.allclose(out1, ref[0], atol=1e-4, rtol=1e-4)

    print("KERNEL_OK")
</pallas_src>

<mosaic_0001>
module attributes {stable_mosaic.version = 11 : i64} {
  func.func @_fcn_kernel(%arg0: i32, %arg1: memref<4x8xf32, #tpu.memory_space<vmem>>, %arg2: memref<30x8xf32, #tpu.memory_space<vmem>>, %arg3: memref<30x1xf32, #tpu.memory_space<vmem>>, %arg4: memref<20x30xf32, #tpu.memory_space<vmem>>, %arg5: memref<20x1xf32, #tpu.memory_space<vmem>>, %arg6: memref<1x20xf32, #tpu.memory_space<vmem>>, %arg7: memref<1x1xf32, #tpu.memory_space<vmem>>, %arg8: memref<1x4xf32, #tpu.memory_space<vmem>>) attributes {dimension_semantics = [#tpu.dimension_semantics<parallel>], iteration_bounds = array<i64: 1>, scalar_prefetch = 0 : i64, scratch_operands = 0 : i64, tpu.core_type = #tpu.core_type<tc>, window_params = [{transform_indices = @transform_0, window_bounds = array<i64: 4, 8>}, {pipeline_mode = #tpu.pipeline_mode<synchronous>, transform_indices = @transform_1, window_bounds = array<i64: 30, 8>}, {pipeline_mode = #tpu.pipeline_mode<synchronous>, transform_indices = @transform_2, window_bounds = array<i64: 30, 1>}, {pipeline_mode = #tpu.pipeline_mode<synchronous>, transform_indices = @transform_3, window_bounds = array<i64: 20, 30>}, {pipeline_mode = #tpu.pipeline_mode<synchronous>, transform_indices = @transform_4, window_bounds = array<i64: 20, 1>}, {pipeline_mode = #tpu.pipeline_mode<synchronous>, transform_indices = @transform_5, window_bounds = array<i64: 1, 20>}, {pipeline_mode = #tpu.pipeline_mode<synchronous>, transform_indices = @transform_6, window_bounds = array<i64: 1, 1>}, {transform_indices = @transform_7, window_bounds = array<i64: 1, 4>}]} {
    %c0 = arith.constant 0 : index
    %c0_0 = arith.constant 0 : index
    %0 = vector.load %arg1[%c0, %c0_0] : memref<4x8xf32, #tpu.memory_space<vmem>>, vector<4x8xf32>
    %c0_1 = arith.constant 0 : index
    %c0_2 = arith.constant 0 : index
    %1 = vector.load %arg2[%c0_1, %c0_2] : memref<30x8xf32, #tpu.memory_space<vmem>>, vector<30x8xf32>
    %cst = arith.constant dense<0.000000e+00> : vector<30x4xf32>
    %2 = tpu.matmul %1, %0, %cst {dimension_numbers = #tpu.dot_dimension_numbers<[1], [1], [0], [0], [0, 0, 1, 0], [], []>} : vector<30x8xf32>, vector<4x8xf32>, vector<30x4xf32> -> vector<30x4xf32>
    %c0_3 = arith.constant 0 : index
    %c0_4 = arith.constant 0 : index
    %3 = vector.load %arg3[%c0_3, %c0_4] : memref<30x1xf32, #tpu.memory_space<vmem>>, vector<30x1xf32>
    %4 = vector.broadcast %3 : vector<30x1xf32> to vector<30x4xf32>
    %5 = arith.addf %2, %4 : vector<30x4xf32>
    %6 = math.tanh %5 : vector<30x4xf32>
    %c0_5 = arith.constant 0 : index
    %c0_6 = arith.constant 0 : index
    %7 = vector.load %arg4[%c0_5, %c0_6] : memref<20x30xf32, #tpu.memory_space<vmem>>, vector<20x30xf32>
    %cst_7 = arith.constant dense<0.000000e+00> : vector<20x4xf32>
    %8 = tpu.matmul %7, %6, %cst_7 {dimension_numbers = #tpu.dot_dimension_numbers<[1], [0], [0], [1], [0, 0, 1, 1], [], []>} : vector<20x30xf32>, vector<30x4xf32>, vector<20x4xf32> -> vector<20x4xf32>
    %c0_8 = arith.constant 0 : index
    %c0_9 = arith.constant 0 : index
    %9 = vector.load %arg5[%c0_8, %c0_9] : memref<20x1xf32, #tpu.memory_space<vmem>>, vector<20x1xf32>
    %10 = vector.broadcast %9 : vector<20x1xf32> to vector<20x4xf32>
    %11 = arith.addf %8, %10 : vector<20x4xf32>
    %12 = math.tanh %11 : vector<20x4xf32>
    %c0_10 = arith.constant 0 : index
    %c0_11 = arith.constant 0 : index
    %13 = vector.load %arg6[%c0_10, %c0_11] : memref<1x20xf32, #tpu.memory_space<vmem>>, vector<1x20xf32>
    %cst_12 = arith.constant dense<0.000000e+00> : vector<1x4xf32>
    %14 = tpu.matmul %13, %12, %cst_12 {dimension_numbers = #tpu.dot_dimension_numbers<[1], [0], [0], [1], [0, 0, 1, 1], [], []>} : vector<1x20xf32>, vector<20x4xf32>, vector<1x4xf32> -> vector<1x4xf32>
    %c0_13 = arith.constant 0 : index
    %c0_14 = arith.constant 0 : index
    %15 = vector.load %arg7[%c0_13, %c0_14] : memref<1x1xf32, #tpu.memory_space<vmem>>, vector<1x1xf32>
    %16 = vector.broadcast %15 : vector<1x1xf32> to vector<1x4xf32>
    %17 = arith.addf %14, %16 : vector<1x4xf32>
    %c0_15 = arith.constant 0 : index
    %c0_16 = arith.constant 0 : index
    %18 = vector.load %arg8[%c0_15, %c0_16] : memref<1x4xf32, #tpu.memory_space<vmem>>, vector<1x4xf32>
    tpu.vector_store %arg8[%c0_15, %c0_16], %17 {strides = array<i32>} : memref<1x4xf32, #tpu.memory_space<vmem>>, vector<1x4xf32>,
    return
  }
  func.func @transform_0(%arg0: i32) -> (i32, i32) {
    %c0_i32 = arith.constant 0 : i32
    %c0_i32_0 = arith.constant 0 : i32
    return %arg0, %c0_i32 : i32, i32
  }
  func.func @transform_1(%arg0: i32) -> (i32, i32) {
    %c0_i32 = arith.constant 0 : i32
    %c0_i32_0 = arith.constant 0 : i32
    %c0_i32_1 = arith.constant 0 : i32
    return %c0_i32, %c0_i32_0 : i32, i32
  }
  func.func @transform_2(%arg0: i32) -> (i32, i32) {
    %c0_i32 = arith.constant 0 : i32
    %c0_i32_0 = arith.constant 0 : i32
    %c0_i32_1 = arith.constant 0 : i32
    return %c0_i32, %c0_i32_0 : i32, i32
  }
  func.func @transform_3(%arg0: i32) -> (i32, i32) {
    %c0_i32 = arith.constant 0 : i32
    %c0_i32_0 = arith.constant 0 : i32
    %c0_i32_1 = arith.constant 0 : i32
    return %c0_i32, %c0_i32_0 : i32, i32
  }
  func.func @transform_4(%arg0: i32) -> (i32, i32) {
    %c0_i32 = arith.constant 0 : i32
    %c0_i32_0 = arith.constant 0 : i32
    %c0_i32_1 = arith.constant 0 : i32
    return %c0_i32, %c0_i32_0 : i32, i32
  }
  func.func @transform_5(%arg0: i32) -> (i32, i32) {
    %c0_i32 = arith.constant 0 : i32
    %c0_i32_0 = arith.constant 0 : i32
    %c0_i32_1 = arith.constant 0 : i32
    return %c0_i32, %c0_i32_0 : i32, i32
  }
  func.func @transform_6(%arg0: i32) -> (i32, i32) {
    %c0_i32 = arith.constant 0 : i32
    %c0_i32_0 = arith.constant 0 : i32
    %c0_i32_1 = arith.constant 0 : i32
    return %c0_i32, %c0_i32_0 : i32, i32
  }
  func.func @transform_7(%arg0: i32) -> (i32, i32) {
    %c0_i32 = arith.constant 0 : i32
    %c0_i32_0 = arith.constant 0 : i32
    return %c0_i32, %arg0 : i32, i32
  }
}

</mosaic_0001>

<bundles_post_ra>
// kernel: tpu_custom_call.1
= control target key start
LH: loop header
LB: loop body
LE: loop exit
PB: predicated region body
PF: predicated region fallthrough
CT: control target
= control target key end

     0   :  { %s622_s0 = inlined_call_operand.vmem [shape: f32[4,8], index: 0, kind: input, shape index: {}]   ;;  %s623_s1 = inlined_call_operand.vmem [shape: f32[30,8], index: 1, kind: input, shape index: {}]   ;;  %s624_s2 = inlined_call_operand.vmem [shape: f32[30,1], index: 2, kind: input, shape index: {}]   ;;  %s625_s3 = inlined_call_operand.vmem [shape: f32[20,30], index: 3, kind: input, shape index: {}]   ;;  %s626_s4 = inlined_call_operand.vmem [shape: f32[20,1], index: 4, kind: input, shape index: {}]   ;;  %s627_s5 = inlined_call_operand.vmem [shape: f32[1,20], index: 5, kind: input, shape index: {}]   ;;  %s628_s6 = inlined_call_operand.<no memory space> [shape: f32[1,1], index: 6, kind: input, shape index: {}]   ;;  %s629_s7 = inlined_call_operand.hbm [shape: f32[1,4], index: 7, kind: output, shape index: {}]  }
   0x1   :  { %v12_v0 = vstv %s628_s6 }
   0x2   :  { %13 = vst [vmem:[#allocation2] sm:$0x1] %v12_v0 }
   0x3   :  { %v29_v1 = vld [vmem:[%s622_s0] sm:$0xf]  ;;  %vm58_vm0 = vcmask 64512   ;;  %v31_v4 = vld [vmem:[%s623_s1 + $0x8] sm:$0xff]  ;;  %v503_v5 = vmov 0   ;;  %v36_v6 = vld [vmem:[%s624_s2 + $0x10] sm:$0xff] }
   0x4   :  { %v30_v2 = vld [vmem:[%s623_s1] sm:$0xff]  ;;  %413 = vmatprep.subr.msk.mxu0 %vm58_vm0, %v29_v1  ;;  %463 = vset.pattern.permute.xlu0 %v503_v5  ;;  %v32_v7 = vld [vmem:[%s623_s1 + $0x10] sm:$0xff]  ;;  %v35_v8 = vld [vmem:[%s624_s2 + $0x8] sm:$0xff] }
   0x5   :  { %415 = vmatprep.mubr.msk.f32.mxu0 %vm58_vm0, %v30_v2  ;;  %v34_v3 = vld [vmem:[%s624_s2] sm:$0xff]  ;;  %414 = vmatpush3.xpose.msk.msra.mxu0 %vm58_vm0, %v29_v1 }
   0x6   :  { %40 = vperm.xlu0 %463, %v34_v3   ;;  %464 = vset.pattern.permute.xlu1 %v503_v5 }
   0x7   :  { %50 = vperm.xlu1 %464, %v36_v6  }
   0x8   :  { %14 = vsyncpa [#allocation4], 0  ;;  %416 = vmatmul.mubr.msk.f32.vlgmr.msra.gmra.mrb[0].mxu0 %vm58_vm0, %v31_v4  ;;  %v37_v9 = vld [vmem:[%s624_s2 + $0x18] sm:$0x3f]  ;;  %v166_v11 = vld [vmem:[%s626_s4] sm:$0xff]  ;;  %v504_v15 = vmov 0.0|0.0   ;;  %v288_v55 = vlaneseq }
   0x9   :  { %418 = vmatprep.mubr.msk.f32.mxu0 %vm58_vm0, %v32_v7  ;;  %v33_v10 = vld [vmem:[%s623_s1 + $0x18] sm:$0x3f]  ;;  %v167_v12 = vld [vmem:[%s626_s4 + $0x8] sm:$0xff]  ;;  %v168_v13 = vld [vmem:[%s626_s4 + $0x10] sm:$0xf]  ;;  %447 = vmatprep.subr.bf16.mxu1 %v504_v15  ;;  %vm505_vm1 = vmmov 0  }
   0xa   :  { %45 = vperm.xlu0 %463, %v35_v8   ;;  %v282_v14 = vld [vmem:[#allocation2] sm:$0x1]  ;;  %454 = vmatprep.subr.bf16.mxu0 %v504_v15  ;;  %v506_v16 = vmov 0.0   ;;  %vm194_vm2 = vcmask 1045504   ;;  %vm507_vm3 = vmmov 1   ;;  %vm184_vm5 = vcmask 244736  }
   0xb   :  { %55 = vperm.xlu1 %464, %v37_v9   ;;  %429 = vmatprep.mubr.msk.f32.mxu1 %vm505_vm1, %v506_v16  ;;  %vm452_vm4 = vmpackc.low %vm194_vm2, %vm507_vm3  ;;  %v163_v35 = vld [vmem:[%s625_s3] sm:$0xff]  ;;  %v164_v36 = vld [vmem:[%s625_s3 + $0x8] sm:$0xff]  ;;  %vm296_vm6 = vcmask 1043456   ;;  %vm292_vm7 = vcmask 162816   ;;  %v289_v56 = vshrl.u32 %v288_v55, 7  ;;  %s508_s29 = smov [#allocation3]  }
   0xc   :  { %419 = vmatmul.mubr.msk.f32.gmra.mrb[2].mxu0 %vm58_vm0, %v33_v10  ;;  %v165_v37 = vld [vmem:[%s625_s3 + $0x10] sm:$0xf]  ;;  %v281_v53 = vld [vmem:[%s627_s5] sm:$0x1]  ;;  %s378_s30 = sshll.u32 %s508_s29, 4  ;;  %vm370_vm8 = vcmask 24576   ;;  %s379_s30 = int_to_ptr.vmem [resolvable:$true] %s378_s30 }
   0xd   :  { %444 = vmatprep.mubr.msk.f32.mxu0 %vm505_vm1, %v506_v16  ;;  %v290_v57 = vsub.s32 0, %v289_v56  ;;  %s479_s8 = scalar_lea.vmem %s379_s30, 16  ;;  %s483_s5 = scalar_lea.vmem %s379_s30, 32 }
   0xe   :  { %171 = vperm.xlu0 %463, %v166_v11   ;;  %p480_p0 = scmp.ne.s32.totalorder %s379_s30, %s479_s8  ;;  %p484_p1 = scmp.lt.s32.totalorder %s379_s30, %s379_s30 }
   0xf   :  { %176 = vperm.xlu1 %464, %v167_v12   ;;  %p485_p2 = scmp.lt.s32.totalorder %s483_s5, %s479_s8 }
  0x11   :  { %p486_p3 = por %p485_p2, %p484_p1 }
  0x12   :  { %181 = vperm.xlu0 %463, %v168_v13  }
  0x13   :  { %285 = vperm.xlu1 %464, %v282_v14   ;;  %p487_p4 = pnand %p486_p3, %p480_p0 }
  0x85   :  { %v41_v17 = vpop.permute.xlu0 %40 }
  0x86   :  { %v51_v18 = vpop.permute.xlu1 %50 }
  0x89   :  { %v46_v19 = vpop.permute.xlu0 %45 }
  0x8a   :  { %v56_v24 = vpop.permute.xlu1 %55 }
  0x8d   :  { %v172_v39 = vpop.permute.xlu0 %171 }
  0x8e   :  { %v177_v42 = vpop.permute.xlu1 %176 }
  0x91   :  { %v182_v46 = vpop.permute.xlu0 %181 }
  0x92   :  { %v286_v58 = vpop.permute.xlu1 %285 }
  0x93   :  { %v291_v59 = vrot.slane %v286_v58, %v290_v57 }
  0xdb   :  { %v417_v20 = vpop.f32.mrb[0].mxu0 }
  0xdc   :  { %v146_v21 = vadd.f32 %v417_v20, %v46_v19  ;;  %v140_v22 = vpop.f32.mrb[1].mxu0 }
  0xdd   :  { %v141_v23 = vadd.f32 %v140_v22, %v41_v17 }
  0xde   :  { %465 = vtanh.f32 %v146_v21 }
  0xdf   :  { %467 = vtanh.f32 %v141_v23  ;;  %v420_v25 = vpop.f32.mrb[2].mxu0 }
  0xe0   :  { %v156_v26 = vadd.f32 %v420_v25, %v56_v24  ;;  %v150_v27 = vpop.f32.mrb[3].mxu0 }
  0xe1   :  { %v151_v28 = vadd.f32 %v150_v27, %v51_v18 }
  0xe2   :  { %469 = vtanh.f32 %v156_v26 }
  0xe3   :  { %471 = vtanh.f32 %v151_v28 }
  0xe8   :  { %v466_v29 = vpop.eup %465 }
  0xe9   :  { %v468_v30 = vpop.eup %467 }
  0xea   :  { %v448_v31 = vpack.c.bf16 %v466_v29, %v468_v30 }
  0xec   :  { %v470_v32 = vpop.eup %469  ;;  %449 = vmatpush3.bf16.msra.mxu1 %v448_v31 }
  0xed   :  { %v472_v33 = vpop.eup %471  ;;  %450 = vmatprep.subr.bf16.mxu1 %v504_v15 }
  0xee   :  { %v451_v34 = vpack.c.bf16 %v470_v32, %v472_v33 }
  0xf0   :  { %453 = vmatpush3.bf16.msk.msra.mxu1 %vm452_vm4, %v451_v34 }
  0xf3   :  { %430 = vmatmul.mubr.msk.f32.vlgmr.msra.gmra.mrb[0].mxu1 %vm184_vm5, %v163_v35 }
  0xf4   :  { %432 = vmatprep.mubr.msk.f32.mxu1 %vm505_vm1, %v506_v16 }
  0xf7   :  { %433 = vmatmul.mubr.msk.f32.gmra.mrb[2].mxu1 %vm184_vm5, %v164_v36 }
  0xf8   :  { %435 = vmatprep.mubr.msk.f32.mxu1 %vm505_vm1, %v506_v16 }
  0xfb   :  { %436 = vmatmul.mubr.msk.f32.gmra.mrb[4].mxu1 %vm184_vm5, %v165_v37 }
 0x1c6   :  { %v264_v38 = vpop.f32.mrb[0].mxu1 }
 0x1c7   :  { %v431_v40 = vpop.f32.mrb[1].mxu1  ;;  %v265_v41 = vadd.f32 %v264_v38, %v172_v39 }
 0x1c9   :  { %473 = vtanh.f32 %v265_v41 }
 0x1ca   :  { %v269_v43 = vpop.f32.mrb[2].mxu1 }
 0x1cb   :  { %v270_v44 = vadd.f32 %v269_v43, %v177_v42  ;;  %v434_v45 = vpop.f32.mrb[3].mxu1 }
 0x1cd   :  { %475 = vtanh.f32 %v270_v44 }
 0x1ce   :  { %v274_v47 = vpop.f32.mrb[4].mxu1 }
 0x1cf   :  { %v275_v48 = vadd.f32 %v274_v47, %v182_v46  ;;  %v437_v49 = vpop.f32.mrb[5].mxu1 }
 0x1d1   :  { %477 = vtanh.f32 %v275_v48 }
 0x1d3   :  { %v474_v50 = vpop.eup %473 }
 0x1d7   :  { %v476_v51 = vpop.eup %475 }
 0x1d8   :  { %v455_v52 = vpack.c.bf16 %v476_v51, %v474_v50 }
 0x1da   :  { %456 = vmatpush3.bf16.msra.mxu0 %v455_v52 }
 0x1db   :  { %442 = vmatprep.subr.mxu0 %v506_v16  ;;  %v478_v54 = vpop.eup %477 }
 0x1de   :  { %443 = vmatpush3.msk.msra.mxu0 %vm296_vm6, %v478_v54 }
 0x1df   :  { %445 = vmatmul.mubr.msk.f32.vlgmr.msra.gmra.mrb[4].mxu0 %vm292_vm7, %v281_v53 }
 0x2b2   :  { %v366_v60 = vpop.f32.mrb[4].mxu0 }
 0x2b3   :  { %v367_v61 = vadd.f32 %v366_v60, %v291_v59  ;;  %v446_v62 = vpop.f32.mrb[5].mxu0 }
 0x2b5   :  { %371 = vst.msk [vmem:[#allocation3] sm:$0x1] %vm370_vm8, %v367_v61 }
 0x2b6   :  { %490 = shalt.err (!%p487_p4)
}
 0x2b7   :  { %s491_s0 = scalar_lea.hbm %s629_s7, 16 }
 0x2b8   :  { %p492_p5 = scmp.ne.s32.totalorder %s629_s7, %s491_s0  ;;  %p495_p6 = scmp.lt.u32.totalorder %s491_s0, %s629_s7 }
 0x2ba   :  { %p497_p7 = pnand %p495_p6, %p492_p5 }
 0x2bc   :  { %500 = shalt.err (!%p497_p7)
}
 0x2bd   :  { %381 = dma.vmem_to_hbm [thread:$0]  %s379_s30, 16, %s629_s7, [#allocation4]  }
 0x2be   :  { %501 = dma.done.wait [#allocation4], 16  }
 0x2bf   :  { %502 = vsyncadd [#allocation4], 4294967280 }
 0x2c0   :  { %385 = vsyncpa [#allocation4], 1 }

</bundles_post_ra>
